<compile_context>
chip_gen: v7x
topology: tpu7x:2x2x1
jax: 0.10.0
libtpu: 0.0.40
codegen_flags: <defaults>
</compile_context>

<pallas_src>
import functools
import math

import jax
import jax.numpy as jnp
import numpy as np
from jax.experimental import pallas as pl
from jax.experimental.pallas import tpu as pltpu


_LANES = 128          # lane width: keep the reduction input lane-dense
_MAX_TILE_ROWS = 512  # 512 x 128 x 4B = 256 KiB per input block -> good HBM efficiency


# --------------------------------------------------------------------------
# Kernel 1: output = sum(x * y) * scale   (scale = 1/sqrt(image_size))
# --------------------------------------------------------------------------

def _scaled_inner_sum_kernel(x_ref, y_ref, o_ref, *, scale):
    # Output block index is constant across the grid axis -> o_ref stays resident
    # in VMEM and acts as the accumulator ("arbitrary" axis).
    @pl.when(pl.program_id(0) == 0)
    def _():
        o_ref[...] = jnp.zeros_like(o_ref)
    part = jnp.sum(x_ref[...] * y_ref[...], keepdims=True)   # (1, 1)
    o_ref[...] += part * scale


def _scaled_inner_sum_impl(x, y, scale):
    xf = x.reshape(-1).astype(jnp.float32)
    yf = y.reshape(-1).astype(jnp.float32)
    n = xf.shape[0]

    rows = -(-n // _LANES)                                    # cdiv
    tile_rows = min(_MAX_TILE_ROWS, ((rows + 7) // 8) * 8)    # sublane multiple of 8
    rows_pad = ((rows + tile_rows - 1) // tile_rows) * tile_rows
    n_pad = rows_pad * _LANES
    if n_pad != n:                                            # zero pad (sum unaffected)
        xf = jnp.pad(xf, (0, n_pad - n))
        yf = jnp.pad(yf, (0, n_pad - n))
    x2 = xf.reshape(rows_pad, _LANES)                         # lane-dense (rows, 128)
    y2 = yf.reshape(rows_pad, _LANES)

    out = pl.pallas_call(
        functools.partial(_scaled_inner_sum_kernel, scale=float(scale)),
        out_shape=jax.ShapeDtypeStruct((1, 1), jnp.float32),
        grid_spec=pltpu.PrefetchScalarGridSpec(
            num_scalar_prefetch=0,
            grid=(rows_pad // tile_rows,),
            in_specs=[
                pl.BlockSpec((tile_rows, _LANES), lambda i: (i, 0)),
                pl.BlockSpec((tile_rows, _LANES), lambda i: (i, 0)),
            ],
            out_specs=pl.BlockSpec((1, 1), lambda i: (0, 0)),
        ),
        compiler_params=pltpu.CompilerParams(
            dimension_semantics=("arbitrary",)),   # reduction axis accumulates in-place
    )(x2, y2)
    return out[0, 0]


@functools.partial(jax.custom_vjp, nondiff_argnums=(2,))
def scaled_inner_sum(x, y, scale):
    """sum(x * y) * scale, computed by a Pallas reduction kernel; differentiable."""
    return _scaled_inner_sum_impl(x, y, scale)


def _scaled_inner_sum_fwd(x, y, scale):
    return _scaled_inner_sum_impl(x, y, scale), (x, y)


def _scaled_inner_sum_bwd(scale, res, g):
    x, y = res
    return (g * scale * y, g * scale * x)


scaled_inner_sum.defvjp(_scaled_inner_sum_fwd, _scaled_inner_sum_bwd)


# --------------------------------------------------------------------------
# Kernel 2: fused  norm -> loss -> EMA / step update   (single pass over grads)
# --------------------------------------------------------------------------

def _plp_loss_kernel(g_ref, steps_ref, ema_ref,
                     loss_ref, ema_out_ref, steps_out_ref,
                     *, beta, inv_batch, inv_blocks):
    g = g_ref[...]                                            # (n_blocks, batch*d_latent)
    sumsq = jnp.sum(g * g, axis=1, keepdims=True)             # (n_blocks, 1)
    norm = jnp.sqrt(sumsq * inv_batch)                        # (n_blocks, 1)

    steps = steps_ref[...]                                    # (1, 1)
    exp_sum_a = ema_ref[...]                                  # (1, 1)

    # a = exp_sum_a / (1 - beta**steps); beta**steps via exp(steps*log(beta))
    denom = 1.0 - jnp.exp(steps * math.log(beta))
    a = exp_sum_a / denom                                     # nan/inf at steps==0; masked below

    diff = norm - a
    loss = jnp.sum(diff * diff, axis=0, keepdims=True) * inv_blocks      # (1, 1)
    mean_norm = jnp.sum(norm, axis=0, keepdims=True) * inv_blocks        # (1, 1)

    loss_ref[...] = jnp.where(steps > 0.0, loss, jnp.zeros_like(loss))
    ema_out_ref[...] = beta * exp_sum_a + (1.0 - beta) * mean_norm
    steps_out_ref[...] = steps + 1.0


def path_length_loss_and_ema(gradients, steps, exp_sum_a, beta):
    """gradients: (n_blocks, batch, d_latent) -> (loss, new_exp_sum_a, new_steps)."""
    n_blocks, batch, d_latent = gradients.shape
    # Flatten (batch, d_latent) into the lane axis: mean_b(sum_d g^2) == sum_{b,d} g^2 / b.
    g2d = gradients.reshape(n_blocks, batch * d_latent).astype(jnp.float32)
    steps2 = jnp.asarray(steps, jnp.float32).reshape(1, 1)
    ema2 = jnp.asarray(exp_sum_a, jnp.float32).reshape(1, 1)

    kernel = functools.partial(
        _plp_loss_kernel, beta=float(beta),
        inv_batch=1.0 / batch, inv_blocks=1.0 / n_blocks)

    scalar_spec = pl.BlockSpec((1, 1), lambda i: (0, 0))
    # Gradients are tiny (n_blocks x batch x d_latent, at most a few MiB), so a single
    # VMEM-resident block is optimal; no pipelining / K-tiling needed here.
    loss, new_ema, new_steps = pl.pallas_call(
        kernel,
        out_shape=(jax.ShapeDtypeStruct((1, 1), jnp.float32),
                   jax.ShapeDtypeStruct((1, 1), jnp.float32),
                   jax.ShapeDtypeStruct((1, 1), jnp.float32)),
        grid_spec=pltpu.PrefetchScalarGridSpec(
            num_scalar_prefetch=0,
            grid=(1,),
            in_specs=[
                pl.BlockSpec((n_blocks, batch * d_latent), lambda i: (0, 0)),
                scalar_spec,
                scalar_spec,
            ],
            out_specs=(scalar_spec, scalar_spec, scalar_spec),
        ),
        compiler_params=pltpu.CompilerParams(
            dimension_semantics=("arbitrary",)),
    )(g2d, steps2, ema2)
    return loss[0, 0], new_ema[0, 0], new_steps[0, 0]


# --------------------------------------------------------------------------
# Public wrapper (functional equivalent of PathLengthPenalty.forward)
# --------------------------------------------------------------------------

def path_length_penalty(w, key, steps, exp_sum_a, *, x_from_w, beta):
    """w: (n_blocks, batch, d_latent). x_from_w: JAX callable w -> images (batch,3,H,W).

    Returns (loss, new_exp_sum_a, new_steps); the PyTorch buffers (exp_sum_a, steps)
    are returned functionally instead of mutated in place.
    """
    x_shape = jax.eval_shape(x_from_w, jax.ShapeDtypeStruct(w.shape, w.dtype))
    image_size = x_shape.shape[2] * x_shape.shape[3]
    scale = 1.0 / math.sqrt(image_size)
    y = jax.random.normal(key, x_shape.shape, jnp.float32)

    # output = (x * y).sum() / sqrt(image_size)  (Pallas kernel 1);
    # gradients w.r.t. w via JAX autodiff, the analogue of torch.autograd.grad.
    def output_fn(w_):
        return scaled_inner_sum(x_from_w(w_), y, scale)

    gradients = jax.grad(output_fn)(w)
    return path_length_loss_and_ema(gradients, steps, exp_sum_a, beta)


# --------------------------------------------------------------------------
# Demo generator + pure-JAX reference
# --------------------------------------------------------------------------

def make_linear_generator(key, n_blocks, d_latent, channels, height, width):
    g = jax.random.normal(
        key, (n_blocks, d_latent, channels * height * width), jnp.float32)
    g = g / math.sqrt(n_blocks * d_latent)

    def generator(w):                       # w: (n_blocks, batch, d_latent)
        flat = jnp.einsum('nbd,ndp->bp', w, g)
        return flat.reshape(w.shape[1], channels, height, width)

    return generator


def ref_path_length_penalty(w, key, steps, exp_sum_a, *, x_from_w, beta):
    x = x_from_w(w)
    image_size = x.shape[2] * x.shape[3]
    y = jax.random.normal(key, x.shape, jnp.float32)

    def output_fn(w_):
        return jnp.sum(x_from_w(w_) * y) / math.sqrt(image_size)

    grads = jax.grad(output_fn)(w)
    norm = jnp.sqrt(jnp.mean(jnp.sum(grads ** 2, axis=2), axis=1))
    a = exp_sum_a / (1.0 - beta ** jnp.asarray(steps, jnp.float32))
    loss = jnp.where(jnp.asarray(steps) > 0, jnp.mean((norm - a) ** 2), 0.0)
    mean = jnp.mean(norm)
    new_exp_sum_a = beta * jnp.asarray(exp_sum_a, jnp.float32) + (1.0 - beta) * mean
    return loss, new_exp_sum_a, jnp.asarray(steps, jnp.float32) + 1.0


# ---------------------------------- main ------------------------------------

if __name__ == "__main__":
    key = jax.random.PRNGKey(0)
    k_w, k_g, k_y0, k_y1, k_y2 = jax.random.split(key, 5)

    n_blocks, batch, d_latent = 8, 2, 32
    channels, height, width = 3, 16, 16
    beta = 0.99

    w = jax.random.normal(k_w, (n_blocks, batch, d_latent), jnp.float32)
    generator = make_linear_generator(k_g, n_blocks, d_latent, channels, height, width)

    # --- standalone check of kernel 1 (single-block and multi-block grids) ---
    x = generator(w)
    y0 = jax.random.normal(k_y0, x.shape, jnp.float32)
    scale = 1.0 / math.sqrt(height * width)
    out = jax.block_until_ready(scaled_inner_sum(x, y0, scale))
    np.testing.assert_allclose(np.asarray(out), np.asarray(jnp.sum(x * y0) * scale),
                               rtol=1e-5, atol=1e-5)
    big = jax.random.normal(k_y0, (8, 3, 64, 64), jnp.float32)   # multi grid-step path
    out_big = jax.block_until_ready(scaled_inner_sum(big, big, 0.5))
    np.testing.assert_allclose(np.asarray(out_big), np.asarray(jnp.sum(big * big) * 0.5),
                               rtol=1e-4, atol=1e-4)

    # --- full PathLengthPenalty forward, two steps (steps==0 path and steps>0 path) ---
    plp = jax.jit(functools.partial(path_length_penalty, x_from_w=generator, beta=beta))

    steps0 = jnp.float32(0.0)
    ema0 = jnp.float32(0.0)

    loss1, ema1, steps1 = plp(w, k_y1, steps0, ema0)
    loss1 = jax.block_until_ready(loss1)
    r_loss1, r_ema1, r_steps1 = ref_path_length_penalty(
        w, k_y1, steps0, ema0, x_from_w=generator, beta=beta)
    np.testing.assert_allclose(np.asarray(loss1), np.asarray(r_loss1), rtol=1e-4, atol=1e-6)
    np.testing.assert_allclose(np.asarray(ema1), np.asarray(r_ema1), rtol=1e-4, atol=1e-6)
    assert float(loss1) == 0.0          # steps == 0 -> loss is exactly 0
    assert float(steps1) == 1.0

    loss2, ema2, steps2 = plp(w, k_y2, steps1, ema1)
    loss2 = jax.block_until_ready(loss2)
    r_loss2, r_ema2, r_steps2 = ref_path_length_penalty(
        w, k_y2, r_steps1, r_ema1, x_from_w=generator, beta=beta)
    np.testing.assert_allclose(np.asarray(loss2), np.asarray(r_loss2), rtol=1e-4, atol=1e-6)
    np.testing.assert_allclose(np.asarray(ema2), np.asarray(r_ema2), rtol=1e-4, atol=1e-6)
    assert float(steps2) == 2.0

    print("KERNEL_OK")
</pallas_src>

<mosaic_0001>
module attributes {stable_mosaic.version = 11 : i64} {
  func.func @_scaled_inner_sum_kernel(%arg0: i32, %arg1: memref<16x128xf32, #tpu.memory_space<vmem>>, %arg2: memref<16x128xf32, #tpu.memory_space<vmem>>, %arg3: memref<1x1xf32, #tpu.memory_space<vmem>>) attributes {dimension_semantics = [#tpu.dimension_semantics<arbitrary>], iteration_bounds = array<i64: 1>, scalar_prefetch = 0 : i64, scratch_operands = 0 : i64, tpu.core_type = #tpu.core_type<tc>, window_params = [{transform_indices = @transform_0, window_bounds = array<i64: 16, 128>}, {transform_indices = @transform_1, window_bounds = array<i64: 16, 128>}, {pipeline_mode = #tpu.pipeline_mode<synchronous>, transform_indices = @transform_2, window_bounds = array<i64: 1, 1>}]} {
    %c0_i32 = arith.constant 0 : i32
    %0 = arith.cmpi eq, %arg0, %c0_i32 : i32
    %1 = arith.extui %0 : i1 to i32
    %c0_i32_0 = arith.constant 0 : i32
    %2 = arith.cmpi ne, %1, %c0_i32_0 : i32
    scf.if %2 {
      %cst_9 = arith.constant 0.000000e+00 : f32
      %16 = vector.broadcast %cst_9 : f32 to vector<1x1xf32>
      %c0_10 = arith.constant 0 : index
      %c0_11 = arith.constant 0 : index
      %17 = vector.load %arg3[%c0_10, %c0_11] : memref<1x1xf32, #tpu.memory_space<vmem>>, vector<1x1xf32>
      tpu.vector_store %arg3[%c0_10, %c0_11], %16 {strides = array<i32>} : memref<1x1xf32, #tpu.memory_space<vmem>>, vector<1x1xf32>,
    } else {
    }
    %c0 = arith.constant 0 : index
    %c0_1 = arith.constant 0 : index
    %3 = vector.load %arg1[%c0, %c0_1] : memref<16x128xf32, #tpu.memory_space<vmem>>, vector<16x128xf32>
    %c0_2 = arith.constant 0 : index
    %c0_3 = arith.constant 0 : index
    %4 = vector.load %arg2[%c0_2, %c0_3] : memref<16x128xf32, #tpu.memory_space<vmem>>, vector<16x128xf32>
    %5 = arith.mulf %3, %4 : vector<16x128xf32>
    %6 = vector.shape_cast %5 : vector<16x128xf32> to vector<1x16x128xf32>
    %cst = arith.constant dense<0.000000e+00> : vector<1xf32>
    %7 = vector.multi_reduction <add>, %6, %cst [1, 2] : vector<1x16x128xf32> to vector<1xf32>
    %8 = vector.shape_cast %7 : vector<1xf32> to vector<1x1x1xf32>
    %9 = vector.extract %8[0, 0, 0] : f32 from vector<1x1x1xf32>
    %10 = vector.broadcast %9 : f32 to vector<1x1xf32>
    %c0_4 = arith.constant 0 : index
    %c0_5 = arith.constant 0 : index
    %11 = vector.load %arg3[%c0_4, %c0_5] : memref<1x1xf32, #tpu.memory_space<vmem>>, vector<1x1xf32>
    %cst_6 = arith.constant 6.250000e-02 : f32
    %12 = vector.broadcast %cst_6 : f32 to vector<1x1xf32>
    %13 = arith.mulf %10, %12 : vector<1x1xf32>
    %14 = arith.addf %11, %13 : vector<1x1xf32>
    %c0_7 = arith.constant 0 : index
    %c0_8 = arith.constant 0 : index
    %15 = vector.load %arg3[%c0_7, %c0_8] : memref<1x1xf32, #tpu.memory_space<vmem>>, vector<1x1xf32>
    tpu.vector_store %arg3[%c0_7, %c0_8], %14 {strides = array<i32>} : memref<1x1xf32, #tpu.memory_space<vmem>>, vector<1x1xf32>,
    return
  }
  func.func @transform_0(%arg0: i32) -> (i32, i32) {
    %c0_i32 = arith.constant 0 : i32
    %c0_i32_0 = arith.constant 0 : i32
    return %arg0, %c0_i32 : i32, i32
  }
  func.func @transform_1(%arg0: i32) -> (i32, i32) {
    %c0_i32 = arith.constant 0 : i32
    %c0_i32_0 = arith.constant 0 : i32
    return %arg0, %c0_i32 : i32, i32
  }
  func.func @transform_2(%arg0: i32) -> (i32, i32) {
    %c0_i32 = arith.constant 0 : i32
    %c0_i32_0 = arith.constant 0 : i32
    %c0_i32_1 = arith.constant 0 : i32
    return %c0_i32, %c0_i32_0 : i32, i32
  }
}

</mosaic_0001>

<bundles_post_ra>
// kernel: tpu_custom_call.1
= control target key start
LH: loop header
LB: loop body
LE: loop exit
PB: predicated region body
PF: predicated region fallthrough
CT: control target
= control target key end

     0   :  { %7 = vsyncpa [#allocation3], 0  ;;  %s223_s0 = inlined_call_operand.hbm [shape: f32[16,128], index: 0, kind: input, shape index: {}]   ;;  %s224_s1 = inlined_call_operand.hbm [shape: f32[16,128], index: 1, kind: input, shape index: {}]   ;;  %s225_s2 = inlined_call_operand.hbm [shape: f32[1,1], index: 2, kind: output, shape index: {}]  }
   0x1   :  { %8 = vsyncpa [#allocation6], 0 }
   0x2   :  { %9 = vsyncpa [#allocation4], 0  ;;  %s164_s9 = smov [#allocation2]   ;;  %s92_s13 = scalar_lea.hbm %s223_s0, 256 }
   0x3   :  { %s15_s10 = sshll.u32 %s164_s9, 4  ;;  %p93_p0 = scmp.ne.s32.totalorder %s223_s0, %s92_s13  ;;  %s16_s10 = int_to_ptr.vmem [resolvable:$true] %s15_s10 }
   0x4   :  { %p96_p1 = scmp.lt.u32.totalorder %s92_s13, %s223_s0 }
   0x6   :  { %p98_p2 = pnand %p96_p1, %p93_p0 }
   0x8   :  { %101 = shalt.err (!%p98_p2)
}
   0x9   :  { %s102_s18 = scalar_lea.vmem %s16_s10, 256  ;;  %p107_p4 = scmp.lt.s32.totalorder %s16_s10, %s16_s10 }
   0xa   :  { %p103_p3 = scmp.ne.s32.totalorder %s16_s10, %s102_s18  ;;  %p108_p5 = scmp.lt.s32.totalorder %s102_s18, %s102_s18 }
   0xc   :  { %p109_p6 = por %p108_p5, %p107_p4 }
   0xe   :  { %p110_p7 = pnand %p109_p6, %p103_p3 }
  0x10   :  { %113 = shalt.err (!%p110_p7)
}
  0x11   :  { %s165_s19 = smov 128   ;;  %s166_s20 = smov 8  }
  0x12   :  { %21 = dma.hbm_to_vmem [thread:$0]  %s223_s0, 256, %s16_s10, [#allocation3], %s165_s19, %s165_s19, %s166_s20  }
  0x13   :  { %s167_s23 = smov [#allocation5]   ;;  %s114_s27 = scalar_lea.hbm %s224_s1, 256 }
  0x14   :  { %s27_s24 = sshll.u32 %s167_s23, 4  ;;  %p115_p8 = scmp.ne.s32.totalorder %s224_s1, %s114_s27  ;;  %s28_s24 = int_to_ptr.vmem [resolvable:$true] %s27_s24 }
  0x15   :  { %p118_p9 = scmp.lt.u32.totalorder %s114_s27, %s224_s1 }
  0x17   :  { %p120_p10 = pnand %p118_p9, %p115_p8 }
  0x19   :  { %123 = shalt.err (!%p120_p10)
}
  0x1a   :  { %s124_s4 = scalar_lea.vmem %s28_s24, 256  ;;  %p129_p12 = scmp.lt.s32.totalorder %s28_s24, %s28_s24 }
  0x1b   :  { %p125_p11 = scmp.ne.s32.totalorder %s28_s24, %s124_s4  ;;  %p130_p13 = scmp.lt.s32.totalorder %s124_s4, %s124_s4 }
  0x1d   :  { %p131_p0 = por %p130_p13, %p129_p12 }
  0x1f   :  { %p132_p1 = pnand %p131_p0, %p125_p11 }
  0x21   :  { %135 = shalt.err (!%p132_p1)
}
  0x22   :  { %33 = dma.hbm_to_vmem [thread:$0]  %s224_s1, 256, %s28_s24, [#allocation6], %s165_s19, %s165_s19, %s166_s20  }
  0x23   :  { %158 = dma.done.wait [#allocation3], 256  }
  0x24   :  { %159 = vsyncadd [#allocation3], 4294967040 }
  0x25   :  { %160 = dma.done.wait [#allocation6], 256  }
  0x26   :  { %161 = vsyncadd [#allocation6], 4294967040  ;;  %vm44_vm0 = vcmask 0   ;;  %v168_v0 = vmov 0.0   ;;  %v46_v1 = vld [vmem:[#allocation2] sm:$0xff]  ;;  %v47_v2 = vld [vmem:[#allocation2 + $0x8] sm:$0xff] }
  0x27   :  { %45 = vst.msk [vmem:[#allocation7] sm:$0x1] %vm44_vm0, %v168_v0  ;;  %v48_v3 = vld [vmem:[#allocation5] sm:$0xff]  ;;  %v49_v4 = vld [vmem:[#allocation5 + $0x8] sm:$0xff]  ;;  %s169_s6 = smov [#allocation7]  }
  0x28   :  { %v50_v5 = vmul.f32 %v48_v3, %v46_v1  ;;  %v51_v6 = vmul.f32 %v49_v4, %v47_v2  ;;  %s74_s7 = sshll.u32 %s169_s6, 4  ;;  %s75_s7 = int_to_ptr.vmem [resolvable:$true] %s74_s7 }
  0x29   :  { %s136_s8 = scalar_lea.vmem %s75_s7, 16  ;;  %s140_s9 = scalar_lea.vmem %s75_s7, 32 }
  0x2a   :  { %v52_v7 = vadd.f32 %v51_v6, %v50_v5  ;;  %p137_p2 = scmp.ne.s32.totalorder %s75_s7, %s136_s8  ;;  %p141_p3 = scmp.lt.s32.totalorder %s75_s7, %s75_s7 }
  0x2b   :  { %p142_p4 = scmp.lt.s32.totalorder %s140_s9, %s136_s8 }
  0x2c   :  { %53 = vadd.xlane.f32.xlu0 %v52_v7 }
  0x2d   :  { %p143_p5 = por %p142_p4, %p141_p3 }
  0x2e   :  { %v63_v16 = vld [vmem:[#allocation7] sm:$0x1] }
  0x2f   :  { %p144_p6 = pnand %p143_p5, %p137_p2 }
  0xb9   :  { %v54_v8 = vpop.xlane.xlu0 %53 }
  0xba   :  { %v55_v9 = vrot.slane %v54_v8, 4 }
  0xbc   :  { %v56_v10 = vadd.f32 %v55_v9, %v54_v8 }
  0xbe   :  { %v57_v11 = vrot.slane %v56_v10, 2 }
  0xc0   :  { %v58_v12 = vadd.f32 %v57_v11, %v56_v10 }
  0xc2   :  { %v59_v13 = vrot.slane %v58_v12, 1 }
  0xc4   :  { %v60_v14 = vadd.f32 %v59_v13, %v58_v12 }
  0xc6   :  { %84 = vpush %v60_v14 }
  0xf7   :  { %s85_s1 = spop %84 }
  0xf8   :  { %v62_v15 = vstv %s85_s1 }
  0xf9   :  { %v64_v17 = vmul.f32 0.0625, %v62_v15 }
  0xfb   :  { %v65_v18 = vadd.f32 %v64_v17, %v63_v16 }
  0xfd   :  { %67 = vst.msk [vmem:[#allocation7] sm:$0x1] %vm44_vm0, %v65_v18 }
  0xfe   :  { %147 = shalt.err (!%p144_p6)
}
  0xff   :  { %s148_s12 = scalar_lea.hbm %s225_s2, 16 }
 0x100   :  { %p149_p7 = scmp.ne.s32.totalorder %s225_s2, %s148_s12  ;;  %p152_p8 = scmp.lt.u32.totalorder %s148_s12, %s225_s2 }
 0x102   :  { %p154_p9 = pnand %p152_p8, %p149_p7 }
 0x104   :  { %157 = shalt.err (!%p154_p9)
}
 0x105   :  { %77 = dma.vmem_to_hbm [thread:$0]  %s75_s7, 16, %s225_s2, [#allocation4]  }
 0x106   :  { %162 = dma.done.wait [#allocation4], 16  }
 0x107   :  { %163 = vsyncadd [#allocation4], 4294967280 }
 0x108   :  { %81 = vsyncpa [#allocation3], 1 }
 0x109   :  { %82 = vsyncpa [#allocation6], 1 }
 0x10a   :  { %83 = vsyncpa [#allocation4], 1 }

</bundles_post_ra>
